<compile_context>
chip_gen: v6e
topology: v6e:2x2x1
jax: 0.10.0
libtpu: 0.0.40
codegen_flags: <defaults>
</compile_context>

<pallas_src>
import jax
import jax.numpy as jnp
from jax import lax
from jax.experimental import pallas as pl
from jax.experimental.pallas import tpu as pltpu


# ---------------------------------------------------------------------------
# Helpers
# ---------------------------------------------------------------------------
def _const_spec(block_shape, single_buffer):
    """BlockSpec for operands whose block index never changes (weights/bias).

    Double-buffering a block that is never re-fetched only reserves 2x VMEM, so
    request Buffered(1) when supported.
    """
    index_map = lambda b, i: (0,) * len(block_shape)
    if single_buffer:
        return pl.BlockSpec(block_shape, index_map, pipeline_mode=pl.Buffered(1))
    return pl.BlockSpec(block_shape, index_map)


def _row_tile(n, target=256, mult=16):
    """Largest row-tile <= target that divides n and is a multiple of `mult`
    (bf16 sublane granularity); falls back to the full dim (always legal)."""
    if n <= target:
        return n
    t = (target // mult) * mult
    while t >= mult:
        if n % t == 0:
            return t
        t -= mult
    return n


def _vmem_limit_bytes():
    """~3/4 of physical VMEM (96 MiB on v5e/v6e, 48 MiB on v7x) instead of the
    16/32 MiB default scoped limit; leaves headroom for Mosaic scratch."""
    try:
        cap = int(pltpu.get_tpu_info().vmem_capacity_bytes)
    except Exception:
        cap = 64 * 1024 * 1024
    return cap * 3 // 4


# ---------------------------------------------------------------------------
# Kernel 1: per-(batch, row-tile) LayerNorm + Q/K/V projections (no bias).
# Three (tn,C)@(C,C) full-depth matmuls written straight into bf16 outputs:
# no live (tn,3C) f32 intermediate.
# ---------------------------------------------------------------------------
def _ln_qkv_kernel(x_ref, gamma_ref, beta_ref, wq_ref, wk_ref, wv_ref,
                   q_ref, k_ref, v_ref):
    x = x_ref[0]                                            # (tn, C) f32
    mean = jnp.mean(x, axis=-1, keepdims=True)
    var = jnp.mean((x - mean) ** 2, axis=-1, keepdims=True)
    xn = (x - mean) * lax.rsqrt(var + 1e-5)                 # EUP rsqrt, no divide
    xn = (xn * gamma_ref[...] + beta_ref[...]).astype(jnp.bfloat16)

    q_ref[0] = jnp.dot(xn, wq_ref[...],
                       preferred_element_type=jnp.float32).astype(q_ref.dtype)
    k_ref[0] = jnp.dot(xn, wk_ref[...],
                       preferred_element_type=jnp.float32).astype(k_ref.dtype)
    v_ref[0] = jnp.dot(xn, wv_ref[...],
                       preferred_element_type=jnp.float32).astype(v_ref.dtype)


# ---------------------------------------------------------------------------
# Kernel 2: per-(batch, query-tile) attention over all heads + fused output
# projection, bias and residual.  Per-head softmax(QK^T)@V results are packed
# into a merged (tq, C) bf16 VMEM scratch (the head-merge of the PyTorch
# out.transpose(1,2).reshape), then ONE (tq,C)@(C,C) MXU matmul does the
# projection.  No Q@K^T scaling (faithful to the PyTorch forward).
# ---------------------------------------------------------------------------
def _attn_proj_kernel(q_ref, k_ref, v_ref, wp_ref, bp_ref, x_ref, o_ref,
                      merged_ref):
    H, Dh = q_ref.shape[1], q_ref.shape[3]

    # Static head loop: each head only writes to the VMEM scratch (no carried
    # value accumulator), so per-head (tq,N) scores die every iteration.
    for h in range(H):
        q = q_ref[0, h]                                     # (tq, Dh) bf16
        k = k_ref[0, h]                                     # (N,  Dh) bf16
        v = v_ref[0, h]                                     # (N,  Dh) bf16

        s = lax.dot_general(q, k, (((1,), (1,)), ((), ())),
                            preferred_element_type=jnp.float32)   # (tq, N)
        s = s - jnp.max(s, axis=-1, keepdims=True)
        p = jnp.exp(s)
        p = p * pl.reciprocal(jnp.sum(p, axis=-1, keepdims=True), approx=True)

        o = jnp.dot(p.astype(jnp.bfloat16), v,
                    preferred_element_type=jnp.float32)     # (tq, Dh)
        merged_ref[:, h * Dh:(h + 1) * Dh] = o.astype(merged_ref.dtype)

    # Single full-contraction-depth projection + bias + residual (dropout = id).
    out = jnp.dot(merged_ref[...], wp_ref[...],
                  preferred_element_type=jnp.float32)       # (tq, C) f32
    o_ref[0] = out + bp_ref[...] + x_ref[0]


# ---------------------------------------------------------------------------
# Forward implementation
# ---------------------------------------------------------------------------
def _forward(x, params, num_heads, *, single_buffer_weights):
    B, N, C = x.shape
    assert C % num_heads == 0
    Dh = C // num_heads
    f32, bf16 = jnp.float32, jnp.bfloat16

    gamma = params["gamma"].reshape(1, C).astype(f32)
    beta = params["beta"].reshape(1, C).astype(f32)
    # PyTorch Linear computes x @ W.T -> pass pre-transposed (in, out) weights.
    wq_t = params["wq"].T.astype(bf16)
    wk_t = params["wk"].T.astype(bf16)
    wv_t = params["wv"].T.astype(bf16)
    wp_t = params["wp"].T.astype(bf16)
    bp = params["bp"].reshape(1, C).astype(f32)

    vmem_limit = _vmem_limit_bytes()

    # ---- Kernel 1: LayerNorm + QKV projections ------------------------------
    tn = _row_tile(N)
    act1_spec = pl.BlockSpec((1, tn, C), lambda b, i: (b, i, 0))
    cost1 = pl.CostEstimate(
        flops=6 * B * N * C * C + 8 * B * N * C,
        transcendentals=B * N,
        bytes_accessed=4 * B * N * C + 6 * C * C + 8 * C + 6 * B * N * C)
    q, k, v = pl.pallas_call(
        _ln_qkv_kernel,
        out_shape=(jax.ShapeDtypeStruct((B, N, C), bf16),) * 3,
        grid=(B, N // tn),
        in_specs=[act1_spec,
                  _const_spec((1, C), single_buffer_weights),
                  _const_spec((1, C), single_buffer_weights),
                  _const_spec((C, C), single_buffer_weights),
                  _const_spec((C, C), single_buffer_weights),
                  _const_spec((C, C), single_buffer_weights)],
        out_specs=(act1_spec, act1_spec, act1_spec),
        compiler_params=pltpu.CompilerParams(
            dimension_semantics=("parallel", "parallel"),
            vmem_limit_bytes=vmem_limit),
        cost_estimate=cost1,
    )(x, gamma, beta, wq_t, wk_t, wv_t)

    # Non-standard head split (B,N,C)->(B,H,N,Dh): row-major relabel, matching
    # the PyTorch .reshape(B, H, N, C//H) exactly.  Free XLA reshape (bitcast).
    qh = q.reshape(B, num_heads, N, Dh)
    kh = k.reshape(B, num_heads, N, Dh)
    vh = v.reshape(B, num_heads, N, Dh)

    # ---- Kernel 2: attention (all heads) + proj + bias + residual -----------
    tq = _row_tile(N)
    q_spec = pl.BlockSpec((1, num_heads, tq, Dh), lambda b, i: (b, 0, i, 0))
    kv_spec = pl.BlockSpec((1, num_heads, N, Dh), lambda b, i: (b, 0, 0, 0))
    act2_spec = pl.BlockSpec((1, tq, C), lambda b, i: (b, i, 0))
    cost2 = pl.CostEstimate(
        flops=4 * B * N * N * C + 2 * B * N * C * C + 4 * B * N * C,
        transcendentals=B * num_heads * N * N + B * num_heads * N,
        bytes_accessed=6 * B * N * C + 2 * C * C + 4 * C + 8 * B * N * C)
    out = pl.pallas_call(
        _attn_proj_kernel,
        out_shape=jax.ShapeDtypeStruct((B, N, C), f32),
        grid=(B, N // tq),
        in_specs=[q_spec, kv_spec, kv_spec,
                  _const_spec((C, C), single_buffer_weights),
                  _const_spec((1, C), single_buffer_weights),
                  act2_spec],
        out_specs=act2_spec,
        scratch_shapes=[pltpu.VMEM((tq, C), bf16)],      # merged head outputs
        compiler_params=pltpu.CompilerParams(
            dimension_semantics=("parallel", "parallel"),
            vmem_limit_bytes=vmem_limit),
        cost_estimate=cost2,
    )(qh, kh, vh, wp_t, bp, x)
    return out


def pere_attention(x, params, num_heads):
    """PEREAttention forward (inference): LN -> QKV -> MHSA -> proj -> +residual."""
    try:
        return _forward(x, params, num_heads, single_buffer_weights=True)
    except Exception:
        # pl.Buffered(1) single-buffering of constant weight blocks is not
        # supported by every jax/Mosaic build -> retry with default buffering.
        return _forward(x, params, num_heads, single_buffer_weights=False)


# ---------------------------------------------------------------------------
# Deterministic parameter init (shapes from PEREAttention.__init__)
# ---------------------------------------------------------------------------
def init_params(key, c1):
    keys = jax.random.split(key, 5)
    s = 1.0 / jnp.sqrt(c1)
    return {
        "gamma": jnp.ones((c1,), jnp.float32),
        "beta": jnp.zeros((c1,), jnp.float32),
        "wq": jax.random.normal(keys[0], (c1, c1), jnp.float32) * s,
        "wk": jax.random.normal(keys[1], (c1, c1), jnp.float32) * s,
        "wv": jax.random.normal(keys[2], (c1, c1), jnp.float32) * s,
        "wp": jax.random.normal(keys[3], (c1, c1), jnp.float32) * s,
        "bp": jax.random.normal(keys[4], (c1,), jnp.float32) * s,
    }


# ---------------------------------------------------------------------------
# Pure-JAX f32 reference (mirrors the PyTorch forward) for validation.
# ---------------------------------------------------------------------------
def pere_attention_ref(x, params, num_heads):
    B, N, C = x.shape
    Dh = C // num_heads
    x1 = x
    mean = jnp.mean(x, axis=-1, keepdims=True)
    var = jnp.mean((x - mean) ** 2, axis=-1, keepdims=True)
    xn = (x - mean) / jnp.sqrt(var + 1e-5) * params["gamma"] + params["beta"]
    Q = (xn @ params["wq"].T).reshape(B, num_heads, N, Dh)
    K = (xn @ params["wk"].T).reshape(B, num_heads, N, Dh)
    V = (xn @ params["wv"].T).reshape(B, num_heads, N, Dh)
    att = Q @ jnp.swapaxes(K, -2, -1)               # no scaling, as in PyTorch
    att = jax.nn.softmax(att, axis=-1)
    out = (att @ V).transpose(0, 2, 1, 3).reshape(B, N, C)
    out = out @ params["wp"].T + params["bp"]
    return out + x1


if __name__ == "__main__":
    B, N, C, H = 2, 8, 32, 4          # batch, tokens, channels (c1), num_heads

    key = jax.random.PRNGKey(0)
    kx, kp = jax.random.split(key)
    x = jax.random.normal(kx, (B, N, C), jnp.float32)
    params = init_params(kp, C)

    out = pere_attention(x, params, H)
    out = jax.block_until_ready(out)

    ref = pere_attention_ref(x, params, H)
    assert out.shape == (B, N, C)
    # bf16 MXU operands (f32 accumulation) -> loosened tolerance vs f32 reference
    assert jnp.allclose(out, ref, rtol=5e-2, atol=5e-2), (
        "mismatch vs reference, max abs err = "
        f"{float(jnp.max(jnp.abs(out - ref)))}")

    print("KERNEL_OK")
</pallas_src>

<mosaic_0001>
module attributes {stable_mosaic.version = 11 : i64} {
  func.func @_ln_qkv_kernel(%arg0: i32, %arg1: i32, %arg2: memref<1x8x32xf32, #tpu.memory_space<vmem>>, %arg3: memref<1x32xf32, #tpu.memory_space<vmem>>, %arg4: memref<1x32xf32, #tpu.memory_space<vmem>>, %arg5: memref<32x32xbf16, #tpu.memory_space<vmem>>, %arg6: memref<32x32xbf16, #tpu.memory_space<vmem>>, %arg7: memref<32x32xbf16, #tpu.memory_space<vmem>>, %arg8: memref<1x8x32xbf16, #tpu.memory_space<vmem>>, %arg9: memref<1x8x32xbf16, #tpu.memory_space<vmem>>, %arg10: memref<1x8x32xbf16, #tpu.memory_space<vmem>>) attributes {dimension_semantics = [#tpu.dimension_semantics<parallel>, #tpu.dimension_semantics<parallel>], iteration_bounds = array<i64: 2, 1>, scalar_prefetch = 0 : i64, scratch_operands = 0 : i64, tpu.core_type = #tpu.core_type<tc>, window_params = [{transform_indices = @transform_0, window_bounds = array<i64: 1, 8, 32>}, {pipeline_mode = #tpu.pipeline_mode<synchronous>, transform_indices = @transform_1, window_bounds = array<i64: 1, 32>}, {pipeline_mode = #tpu.pipeline_mode<synchronous>, transform_indices = @transform_2, window_bounds = array<i64: 1, 32>}, {pipeline_mode = #tpu.pipeline_mode<synchronous>, transform_indices = @transform_3, window_bounds = array<i64: 32, 32>}, {pipeline_mode = #tpu.pipeline_mode<synchronous>, transform_indices = @transform_4, window_bounds = array<i64: 32, 32>}, {pipeline_mode = #tpu.pipeline_mode<synchronous>, transform_indices = @transform_5, window_bounds = array<i64: 32, 32>}, {transform_indices = @transform_6, window_bounds = array<i64: 1, 8, 32>}, {transform_indices = @transform_7, window_bounds = array<i64: 1, 8, 32>}, {transform_indices = @transform_8, window_bounds = array<i64: 1, 8, 32>}]} {
    %c0 = arith.constant 0 : index
    %c0_0 = arith.constant 0 : index
    %c0_1 = arith.constant 0 : index
    %0 = vector.load %arg2[%c0, %c0_0, %c0_1] : memref<1x8x32xf32, #tpu.memory_space<vmem>>, vector<1x8x32xf32>
    %1 = vector.shape_cast %0 : vector<1x8x32xf32> to vector<8x32xf32>
    %cst = arith.constant dense<0.000000e+00> : vector<8xf32>
    %2 = vector.multi_reduction <add>, %1, %cst [1] : vector<8x32xf32> to vector<8xf32>
    %3 = vector.shape_cast %2 : vector<8xf32> to vector<8x1xf32>
    %cst_2 = arith.constant 3.200000e+01 : f32
    %4 = vector.broadcast %cst_2 : f32 to vector<8x1xf32>
    %5 = arith.divf %3, %4 : vector<8x1xf32>
    %6 = vector.broadcast %5 : vector<8x1xf32> to vector<8x32xf32>
    %7 = arith.subf %1, %6 : vector<8x32xf32>
    %8 = arith.mulf %7, %7 : vector<8x32xf32>
    %cst_3 = arith.constant dense<0.000000e+00> : vector<8xf32>
    %9 = vector.multi_reduction <add>, %8, %cst_3 [1] : vector<8x32xf32> to vector<8xf32>
    %10 = vector.shape_cast %9 : vector<8xf32> to vector<8x1xf32>
    %cst_4 = arith.constant 3.200000e+01 : f32
    %11 = vector.broadcast %cst_4 : f32 to vector<8x1xf32>
    %12 = arith.divf %10, %11 : vector<8x1xf32>
    %13 = vector.broadcast %5 : vector<8x1xf32> to vector<8x32xf32>
    %14 = arith.subf %1, %13 : vector<8x32xf32>
    %cst_5 = arith.constant 9.99999974E-6 : f32
    %15 = vector.broadcast %cst_5 : f32 to vector<8x1xf32>
    %16 = arith.addf %12, %15 : vector<8x1xf32>
    %17 = math.rsqrt %16 : vector<8x1xf32>
    %18 = vector.broadcast %17 : vector<8x1xf32> to vector<8x32xf32>
    %19 = arith.mulf %14, %18 : vector<8x32xf32>
    %c0_6 = arith.constant 0 : index
    %c0_7 = arith.constant 0 : index
    %20 = vector.load %arg3[%c0_6, %c0_7] : memref<1x32xf32, #tpu.memory_space<vmem>>, vector<1x32xf32>
    %21 = vector.broadcast %20 : vector<1x32xf32> to vector<8x32xf32>
    %22 = arith.mulf %19, %21 : vector<8x32xf32>
    %c0_8 = arith.constant 0 : index
    %c0_9 = arith.constant 0 : index
    %23 = vector.load %arg4[%c0_8, %c0_9] : memref<1x32xf32, #tpu.memory_space<vmem>>, vector<1x32xf32>
    %24 = vector.broadcast %23 : vector<1x32xf32> to vector<8x32xf32>
    %25 = arith.addf %22, %24 : vector<8x32xf32>
    %26 = arith.truncf %25 : vector<8x32xf32> to vector<8x32xbf16>
    %c0_10 = arith.constant 0 : index
    %c0_11 = arith.constant 0 : index
    %27 = vector.load %arg5[%c0_10, %c0_11] : memref<32x32xbf16, #tpu.memory_space<vmem>>, vector<32x32xbf16>
    %cst_12 = arith.constant dense<0.000000e+00> : vector<8x32xf32>
    %28 = tpu.matmul %26, %27, %cst_12 {dimension_numbers = #tpu.dot_dimension_numbers<[1], [0], [0], [1], [0, 0, 1, 1], [], []>} : vector<8x32xbf16>, vector<32x32xbf16>, vector<8x32xf32> -> vector<8x32xf32>
    %29 = arith.truncf %28 : vector<8x32xf32> to vector<8x32xbf16>
    %c0_13 = arith.constant 0 : index
    %c0_14 = arith.constant 0 : index
    %c0_15 = arith.constant 0 : index
    %30 = vector.load %arg8[%c0_13, %c0_14, %c0_15] : memref<1x8x32xbf16, #tpu.memory_space<vmem>>, vector<1x8x32xbf16>
    %31 = vector.shape_cast %30 : vector<1x8x32xbf16> to vector<8x32xbf16>
    %32 = vector.shape_cast %29 : vector<8x32xbf16> to vector<1x8x32xbf16>
    tpu.vector_store %arg8[%c0_13, %c0_14, %c0_15], %32 {strides = array<i32>} : memref<1x8x32xbf16, #tpu.memory_space<vmem>>, vector<1x8x32xbf16>,
    %c0_16 = arith.constant 0 : index
    %c0_17 = arith.constant 0 : index
    %33 = vector.load %arg6[%c0_16, %c0_17] : memref<32x32xbf16, #tpu.memory_space<vmem>>, vector<32x32xbf16>
    %cst_18 = arith.constant dense<0.000000e+00> : vector<8x32xf32>
    %34 = tpu.matmul %26, %33, %cst_18 {dimension_numbers = #tpu.dot_dimension_numbers<[1], [0], [0], [1], [0, 0, 1, 1], [], []>} : vector<8x32xbf16>, vector<32x32xbf16>, vector<8x32xf32> -> vector<8x32xf32>
    %35 = arith.truncf %34 : vector<8x32xf32> to vector<8x32xbf16>
    %c0_19 = arith.constant 0 : index
    %c0_20 = arith.constant 0 : index
    %c0_21 = arith.constant 0 : index
    %36 = vector.load %arg9[%c0_19, %c0_20, %c0_21] : memref<1x8x32xbf16, #tpu.memory_space<vmem>>, vector<1x8x32xbf16>
    %37 = vector.shape_cast %36 : vector<1x8x32xbf16> to vector<8x32xbf16>
    %38 = vector.shape_cast %35 : vector<8x32xbf16> to vector<1x8x32xbf16>
    tpu.vector_store %arg9[%c0_19, %c0_20, %c0_21], %38 {strides = array<i32>} : memref<1x8x32xbf16, #tpu.memory_space<vmem>>, vector<1x8x32xbf16>,
    %c0_22 = arith.constant 0 : index
    %c0_23 = arith.constant 0 : index
    %39 = vector.load %arg7[%c0_22, %c0_23] : memref<32x32xbf16, #tpu.memory_space<vmem>>, vector<32x32xbf16>
    %cst_24 = arith.constant dense<0.000000e+00> : vector<8x32xf32>
    %40 = tpu.matmul %26, %39, %cst_24 {dimension_numbers = #tpu.dot_dimension_numbers<[1], [0], [0], [1], [0, 0, 1, 1], [], []>} : vector<8x32xbf16>, vector<32x32xbf16>, vector<8x32xf32> -> vector<8x32xf32>
    %41 = arith.truncf %40 : vector<8x32xf32> to vector<8x32xbf16>
    %c0_25 = arith.constant 0 : index
    %c0_26 = arith.constant 0 : index
    %c0_27 = arith.constant 0 : index
    %42 = vector.load %arg10[%c0_25, %c0_26, %c0_27] : memref<1x8x32xbf16, #tpu.memory_space<vmem>>, vector<1x8x32xbf16>
    %43 = vector.shape_cast %42 : vector<1x8x32xbf16> to vector<8x32xbf16>
    %44 = vector.shape_cast %41 : vector<8x32xbf16> to vector<1x8x32xbf16>
    tpu.vector_store %arg10[%c0_25, %c0_26, %c0_27], %44 {strides = array<i32>} : memref<1x8x32xbf16, #tpu.memory_space<vmem>>, vector<1x8x32xbf16>,
    return
  }
  func.func @transform_0(%arg0: i32, %arg1: i32) -> (i32, i32, i32) {
    %c0_i32 = arith.constant 0 : i32
    %c0_i32_0 = arith.constant 0 : i32
    return %arg0, %arg1, %c0_i32 : i32, i32, i32
  }
  func.func @transform_1(%arg0: i32, %arg1: i32) -> (i32, i32) {
    %c0_i32 = arith.constant 0 : i32
    %c0_i32_0 = arith.constant 0 : i32
    %c0_i32_1 = arith.constant 0 : i32
    return %c0_i32, %c0_i32_0 : i32, i32
  }
  func.func @transform_2(%arg0: i32, %arg1: i32) -> (i32, i32) {
    %c0_i32 = arith.constant 0 : i32
    %c0_i32_0 = arith.constant 0 : i32
    %c0_i32_1 = arith.constant 0 : i32
    return %c0_i32, %c0_i32_0 : i32, i32
  }
  func.func @transform_3(%arg0: i32, %arg1: i32) -> (i32, i32) {
    %c0_i32 = arith.constant 0 : i32
    %c0_i32_0 = arith.constant 0 : i32
    %c0_i32_1 = arith.constant 0 : i32
    return %c0_i32, %c0_i32_0 : i32, i32
  }
  func.func @transform_4(%arg0: i32, %arg1: i32) -> (i32, i32) {
    %c0_i32 = arith.constant 0 : i32
    %c0_i32_0 = arith.constant 0 : i32
    %c0_i32_1 = arith.constant 0 : i32
    return %c0_i32, %c0_i32_0 : i32, i32
  }
  func.func @transform_5(%arg0: i32, %arg1: i32) -> (i32, i32) {
    %c0_i32 = arith.constant 0 : i32
    %c0_i32_0 = arith.constant 0 : i32
    %c0_i32_1 = arith.constant 0 : i32
    return %c0_i32, %c0_i32_0 : i32, i32
  }
  func.func @transform_6(%arg0: i32, %arg1: i32) -> (i32, i32, i32) {
    %c0_i32 = arith.constant 0 : i32
    %c0_i32_0 = arith.constant 0 : i32
    return %arg0, %arg1, %c0_i32 : i32, i32, i32
  }
  func.func @transform_7(%arg0: i32, %arg1: i32) -> (i32, i32, i32) {
    %c0_i32 = arith.constant 0 : i32
    %c0_i32_0 = arith.constant 0 : i32
    return %arg0, %arg1, %c0_i32 : i32, i32, i32
  }
  func.func @transform_8(%arg0: i32, %arg1: i32) -> (i32, i32, i32) {
    %c0_i32 = arith.constant 0 : i32
    %c0_i32_0 = arith.constant 0 : i32
    return %arg0, %arg1, %c0_i32 : i32, i32, i32
  }
}

module attributes {stable_mosaic.version = 11 : i64} {
  func.func @_ln_qkv_kernel(%arg0: i32, %arg1: i32, %arg2: memref<1x8x32xf32, #tpu.memory_space<vmem>>, %arg3: memref<1x32xf32, #tpu.memory_space<vmem>>, %arg4: memref<1x32xf32, #tpu.memory_space<vmem>>, %arg5: memref<32x32xbf16, #tpu.memory_space<vmem>>, %arg6: memref<32x32xbf16, #tpu.memory_space<vmem>>, %arg7: memref<32x32xbf16, #tpu.memory_space<vmem>>, %arg8: memref<1x8x32xbf16, #tpu.memory_space<vmem>>, %arg9: memref<1x8x32xbf16, #tpu.memory_space<vmem>>, %arg10: memref<1x8x32xbf16, #tpu.memory_space<vmem>>) attributes {dimension_semantics = [#tpu.dimension_semantics<parallel>, #tpu.dimension_semantics<parallel>], iteration_bounds = array<i64: 2, 1>, scalar_prefetch = 0 : i64, scratch_operands = 0 : i64, tpu.core_type = #tpu.core_type<tc>, window_params = [{transform_indices = @transform_0, window_bounds = array<i64: 1, 8, 32>}, {pipeline_mode = #tpu.pipeline_mode<synchronous>, transform_indices = @transform_1, window_bounds = array<i64: 1, 32>}, {pipeline_mode = #tpu.pipeline_mode<synchronous>, transform_indices = @transform_2, window_bounds = array<i64: 1, 32>}, {pipeline_mode = #tpu.pipeline_mode<synchronous>, transform_indices = @transform_3, window_bounds = array<i64: 32, 32>}, {pipeline_mode = #tpu.pipeline_mode<synchronous>, transform_indices = @transform_4, window_bounds = array<i64: 32, 32>}, {pipeline_mode = #tpu.pipeline_mode<synchronous>, transform_indices = @transform_5, window_bounds = array<i64: 32, 32>}, {transform_indices = @transform_6, window_bounds = array<i64: 1, 8, 32>}, {transform_indices = @transform_7, window_bounds = array<i64: 1, 8, 32>}, {transform_indices = @transform_8, window_bounds = array<i64: 1, 8, 32>}]} {
    %c0 = arith.constant 0 : index
    %c0_0 = arith.constant 0 : index
    %c0_1 = arith.constant 0 : index
    %0 = vector.load %arg2[%c0, %c0_0, %c0_1] : memref<1x8x32xf32, #tpu.memory_space<vmem>>, vector<1x8x32xf32>
    %1 = vector.shape_cast %0 : vector<1x8x32xf32> to vector<8x32xf32>
    %cst = arith.constant dense<0.000000e+00> : vector<8xf32>
    %2 = vector.multi_reduction <add>, %1, %cst [1] : vector<8x32xf32> to vector<8xf32>
    %3 = vector.shape_cast %2 : vector<8xf32> to vector<8x1xf32>
    %cst_2 = arith.constant 3.200000e+01 : f32
    %4 = vector.broadcast %cst_2 : f32 to vector<8x1xf32>
    %5 = arith.divf %3, %4 : vector<8x1xf32>
    %6 = vector.broadcast %5 : vector<8x1xf32> to vector<8x32xf32>
    %7 = arith.subf %1, %6 : vector<8x32xf32>
    %8 = arith.mulf %7, %7 : vector<8x32xf32>
    %cst_3 = arith.constant dense<0.000000e+00> : vector<8xf32>
    %9 = vector.multi_reduction <add>, %8, %cst_3 [1] : vector<8x32xf32> to vector<8xf32>
    %10 = vector.shape_cast %9 : vector<8xf32> to vector<8x1xf32>
    %cst_4 = arith.constant 3.200000e+01 : f32
    %11 = vector.broadcast %cst_4 : f32 to vector<8x1xf32>
    %12 = arith.divf %10, %11 : vector<8x1xf32>
    %13 = vector.broadcast %5 : vector<8x1xf32> to vector<8x32xf32>
    %14 = arith.subf %1, %13 : vector<8x32xf32>
    %cst_5 = arith.constant 9.99999974E-6 : f32
    %15 = vector.broadcast %cst_5 : f32 to vector<8x1xf32>
    %16 = arith.addf %12, %15 : vector<8x1xf32>
    %17 = math.rsqrt %16 : vector<8x1xf32>
    %18 = vector.broadcast %17 : vector<8x1xf32> to vector<8x32xf32>
    %19 = arith.mulf %14, %18 : vector<8x32xf32>
    %c0_6 = arith.constant 0 : index
    %c0_7 = arith.constant 0 : index
    %20 = vector.load %arg3[%c0_6, %c0_7] : memref<1x32xf32, #tpu.memory_space<vmem>>, vector<1x32xf32>
    %21 = vector.broadcast %20 : vector<1x32xf32> to vector<8x32xf32>
    %22 = arith.mulf %19, %21 : vector<8x32xf32>
    %c0_8 = arith.constant 0 : index
    %c0_9 = arith.constant 0 : index
    %23 = vector.load %arg4[%c0_8, %c0_9] : memref<1x32xf32, #tpu.memory_space<vmem>>, vector<1x32xf32>
    %24 = vector.broadcast %23 : vector<1x32xf32> to vector<8x32xf32>
    %25 = arith.addf %22, %24 : vector<8x32xf32>
    %26 = arith.truncf %25 : vector<8x32xf32> to vector<8x32xbf16>
    %c0_10 = arith.constant 0 : index
    %c0_11 = arith.constant 0 : index
    %27 = vector.load %arg5[%c0_10, %c0_11] : memref<32x32xbf16, #tpu.memory_space<vmem>>, vector<32x32xbf16>
    %cst_12 = arith.constant dense<0.000000e+00> : vector<8x32xf32>
    %28 = tpu.matmul %26, %27, %cst_12 {dimension_numbers = #tpu.dot_dimension_numbers<[1], [0], [0], [1], [0, 0, 1, 1], [], []>} : vector<8x32xbf16>, vector<32x32xbf16>, vector<8x32xf32> -> vector<8x32xf32>
    %29 = arith.truncf %28 : vector<8x32xf32> to vector<8x32xbf16>
    %c0_13 = arith.constant 0 : index
    %c0_14 = arith.constant 0 : index
    %c0_15 = arith.constant 0 : index
    %30 = vector.load %arg8[%c0_13, %c0_14, %c0_15] : memref<1x8x32xbf16, #tpu.memory_space<vmem>>, vector<1x8x32xbf16>
    %31 = vector.shape_cast %30 : vector<1x8x32xbf16> to vector<8x32xbf16>
    %32 = vector.shape_cast %29 : vector<8x32xbf16> to vector<1x8x32xbf16>
    tpu.vector_store %arg8[%c0_13, %c0_14, %c0_15], %32 {strides = array<i32>} : memref<1x8x32xbf16, #tpu.memory_space<vmem>>, vector<1x8x32xbf16>,
    %c0_16 = arith.constant 0 : index
    %c0_17 = arith.constant 0 : index
    %33 = vector.load %arg6[%c0_16, %c0_17] : memref<32x32xbf16, #tpu.memory_space<vmem>>, vector<32x32xbf16>
    %cst_18 = arith.constant dense<0.000000e+00> : vector<8x32xf32>
    %34 = tpu.matmul %26, %33, %cst_18 {dimension_numbers = #tpu.dot_dimension_numbers<[1], [0], [0], [1], [0, 0, 1, 1], [], []>} : vector<8x32xbf16>, vector<32x32xbf16>, vector<8x32xf32> -> vector<8x32xf32>
    %35 = arith.truncf %34 : vector<8x32xf32> to vector<8x32xbf16>
    %c0_19 = arith.constant 0 : index
    %c0_20 = arith.constant 0 : index
    %c0_21 = arith.constant 0 : index
    %36 = vector.load %arg9[%c0_19, %c0_20, %c0_21] : memref<1x8x32xbf16, #tpu.memory_space<vmem>>, vector<1x8x32xbf16>
    %37 = vector.shape_cast %36 : vector<1x8x32xbf16> to vector<8x32xbf16>
    %38 = vector.shape_cast %35 : vector<8x32xbf16> to vector<1x8x32xbf16>
    tpu.vector_store %arg9[%c0_19, %c0_20, %c0_21], %38 {strides = array<i32>} : memref<1x8x32xbf16, #tpu.memory_space<vmem>>, vector<1x8x32xbf16>,
    %c0_22 = arith.constant 0 : index
    %c0_23 = arith.constant 0 : index
    %39 = vector.load %arg7[%c0_22, %c0_23] : memref<32x32xbf16, #tpu.memory_space<vmem>>, vector<32x32xbf16>
    %cst_24 = arith.constant dense<0.000000e+00> : vector<8x32xf32>
    %40 = tpu.matmul %26, %39, %cst_24 {dimension_numbers = #tpu.dot_dimension_numbers<[1], [0], [0], [1], [0, 0, 1, 1], [], []>} : vector<8x32xbf16>, vector<32x32xbf16>, vector<8x32xf32> -> vector<8x32xf32>
    %41 = arith.truncf %40 : vector<8x32xf32> to vector<8x32xbf16>
    %c0_25 = arith.constant 0 : index
    %c0_26 = arith.constant 0 : index
    %c0_27 = arith.constant 0 : index
    %42 = vector.load %arg10[%c0_25, %c0_26, %c0_27] : memref<1x8x32xbf16, #tpu.memory_space<vmem>>, vector<1x8x32xbf16>
    %43 = vector.shape_cast %42 : vector<1x8x32xbf16> to vector<8x32xbf16>
    %44 = vector.shape_cast %41 : vector<8x32xbf16> to vector<1x8x32xbf16>
    tpu.vector_store %arg10[%c0_25, %c0_26, %c0_27], %44 {strides = array<i32>} : memref<1x8x32xbf16, #tpu.memory_space<vmem>>, vector<1x8x32xbf16>,
    return
  }
  func.func @transform_0(%arg0: i32, %arg1: i32) -> (i32, i32, i32) {
    %c0_i32 = arith.constant 0 : i32
    %c0_i32_0 = arith.constant 0 : i32
    return %arg0, %arg1, %c0_i32 : i32, i32, i32
  }
  func.func @transform_1(%arg0: i32, %arg1: i32) -> (i32, i32) {
    %c0_i32 = arith.constant 0 : i32
    %c0_i32_0 = arith.constant 0 : i32
    %c0_i32_1 = arith.constant 0 : i32
    return %c0_i32, %c0_i32_0 : i32, i32
  }
  func.func @transform_2(%arg0: i32, %arg1: i32) -> (i32, i32) {
    %c0_i32 = arith.constant 0 : i32
    %c0_i32_0 = arith.constant 0 : i32
    %c0_i32_1 = arith.constant 0 : i32
    return %c0_i32, %c0_i32_0 : i32, i32
  }
  func.func @transform_3(%arg0: i32, %arg1: i32) -> (i32, i32) {
    %c0_i32 = arith.constant 0 : i32
    %c0_i32_0 = arith.constant 0 : i32
    %c0_i32_1 = arith.constant 0 : i32
    return %c0_i32, %c0_i32_0 : i32, i32
  }
  func.func @transform_4(%arg0: i32, %arg1: i32) -> (i32, i32) {
    %c0_i32 = arith.constant 0 : i32
    %c0_i32_0 = arith.constant 0 : i32
    %c0_i32_1 = arith.constant 0 : i32
    return %c0_i32, %c0_i32_0 : i32, i32
  }
  func.func @transform_5(%arg0: i32, %arg1: i32) -> (i32, i32) {
    %c0_i32 = arith.constant 0 : i32
    %c0_i32_0 = arith.constant 0 : i32
    %c0_i32_1 = arith.constant 0 : i32
    return %c0_i32, %c0_i32_0 : i32, i32
  }
  func.func @transform_6(%arg0: i32, %arg1: i32) -> (i32, i32, i32) {
    %c0_i32 = arith.constant 0 : i32
    %c0_i32_0 = arith.constant 0 : i32
    return %arg0, %arg1, %c0_i32 : i32, i32, i32
  }
  func.func @transform_7(%arg0: i32, %arg1: i32) -> (i32, i32, i32) {
    %c0_i32 = arith.constant 0 : i32
    %c0_i32_0 = arith.constant 0 : i32
    return %arg0, %arg1, %c0_i32 : i32, i32, i32
  }
  func.func @transform_8(%arg0: i32, %arg1: i32) -> (i32, i32, i32) {
    %c0_i32 = arith.constant 0 : i32
    %c0_i32_0 = arith.constant 0 : i32
    return %arg0, %arg1, %c0_i32 : i32, i32, i32
  }
}

</mosaic_0001>

<bundles_post_ra>
// kernel: tpu_custom_call.1
= control target key start
LH: loop header
LB: loop body
LE: loop exit
PB: predicated region body
PF: predicated region fallthrough
CT: control target
= control target key end

     0   :  { %s1612_s0 = inlined_call_operand.hbm [shape: f32[2,8,32], index: 0, kind: input, shape index: {}]   ;;  %s1613_s1 = inlined_call_operand.vmem [shape: f32[1,32], index: 1, kind: input, shape index: {}]   ;;  %s1614_s2 = inlined_call_operand.vmem [shape: f32[1,32], index: 2, kind: input, shape index: {}]   ;;  %s1615_s3 = inlined_call_operand.hbm [shape: bf16[32,32], index: 3, kind: input, shape index: {}]   ;;  %s1616_s4 = inlined_call_operand.hbm [shape: bf16[32,32], index: 4, kind: input, shape index: {}]   ;;  %s1617_s5 = inlined_call_operand.hbm [shape: bf16[32,32], index: 5, kind: input, shape index: {}]   ;;  %s1618_s6 = inlined_call_operand.hbm [shape: bf16[2,8,32], index: 6, kind: output, shape index: {0}]   ;;  %s1619_s7 = inlined_call_operand.hbm [shape: bf16[2,8,32], index: 7, kind: output, shape index: {1}]   ;;  %s1620_s8 = inlined_call_operand.hbm [shape: bf16[2,8,32], index: 8, kind: output, shape index: {2}]  }
   0x1   :  { %1625 = sst [smem:[#allocation20_spill]] %s1615_s3 }
   0x2   :  { %1626 = sst [smem:[#allocation21_spill]] %s1616_s4 }
   0x3   :  { %1627 = sst [smem:[#allocation22_spill]] %s1617_s5 }
   0x4   :  { %14 = vsyncpa [#allocation3], 0 }
   0x5   :  { %16 = vsyncpa [#allocation3 + $0x1], 0 }
   0x6   :  { %17 = vsyncpa [#allocation6], 0 }
   0x7   :  { %18 = vsyncpa [#allocation9], 0 }
   0x8   :  { %19 = vsyncpa [#allocation4], 0 }
   0x9   :  { %21 = vsyncpa [#allocation4 + $0x1], 0 }
   0xa   :  { %22 = vsyncpa [#allocation12], 0 }
   0xb   :  { %24 = vsyncpa [#allocation12 + $0x1], 0  ;;  %s1333_s27 = smov 0   ;;  %s1335_s28 = smov 0  }
   0xc   :  { %s1337_s29 = smov 0   ;;  %s1339_s30 = smov 0  }
   0xd   :  { %s1341_s9 = smov 0   ;;  %s1343_s10 = smov 0  }
   0xe LB: > { %s1364_s11 = sadd.s32 4294967295, %s1275_s10   ;;  %s1623_s12 = sadd.s32 4294967294, %s1275_s10   ;;  %s1275_s10 = sphi %s1343_s10, %s30_s10   ;;  %s1271_s9 = sphi %s1341_s9, %s1652_s9   ;;  %s1267_s30 = sphi %s1339_s30, %s1651_s30   ;;  %s1263_s29 = sphi %s1337_s29, %s1650_s29   ;;  %s1259_s28 = sphi %s1335_s28, %s1649_s28   ;;  %s1255_s27 = sphi %s1333_s27, %s1648_s27  }
   0xf   : > { %p64_p0 = scmp.ne.s32.totalorder %s1259_s28, %s1255_s27  ;;  %p1621_p1 = scmp.eq.s32.totalorder %s1364_s11, 0 }
  0x10   : > { %p201_p3 = scmp.eq.s32.totalorder %s1623_s12, 1  ;;  %p843_p5 = scmp.ge.s32.totalorder %s1275_s10, 1 }
  0x11   : > { %p1375_p4 = por %p1621_p1, %p64_p0  ;;  %p264_p7 = scmp.lt.s32.totalorder %s1275_s10, 3 }
  0x12   : > { %p1380_p6 = por %p201_p3, %p64_p0  ;;  %s1277_s16 = smov [#allocation5]  }
  0x13   : > { %s1628_s13 = scalar_select %p1375_p4, 1, 0 }
  0x14   : > { %s1629_s14 = scalar_select %p1380_p6, 1, 0 }
  0x15   : > { %p1385_p8 = pnand %p843_p5, %p264_p7  ;;  %s282_s17 = sshll.u32 %s1277_s16, 4  ;;  %s283_s17 = int_to_ptr.vmem [resolvable:$true] %s282_s17 }
  0x16   : > { %s1278_s19 = smov [#allocation7]   ;;  %s1279_s21 = smov [#allocation8]  }
  0x17   : > { %p930_p9 = pneg %p1385_p8  ;;  %s295_s20 = sshll.u32 %s1278_s19, 4  ;;  %s296_s20 = int_to_ptr.vmem [resolvable:$true] %s295_s20 }
  0x18   : > { %s308_s22 = sshll.u32 %s1279_s21, 4  ;;  %s1036_s23 = scalar_lea.vmem %s283_s17, 256  ;;  %s309_s22 = int_to_ptr.vmem [resolvable:$true] %s308_s22 }
  0x19   : > { %p1394_p11 = pnand %p930_p9, %p1621_p1  ;;  %p1037_p13 = scmp.ne.s32.totalorder %s283_s17, %s1036_s23 }
  0x1a   : > { %p1044_p5 = scmp.lt.s32.totalorder %s283_s17, %s283_s17  ;;  %p1045_p7 = scmp.lt.s32.totalorder %s1036_s23, %s1036_s23 }
  0x1b   : > { %p1027_p12 = pneg %p1394_p11 }
  0x1c   : > { %p1046_p9 = por %p1045_p7, %p1044_p5 }
  0x1d   : > { %p1039_p0 = pnand %p1037_p13, %p1027_p12 }
  0x1f   : > { %p1040_p3 = pneg %p1039_p0 }
  0x21   : > { %p1047_p10 = pnand %p1046_p9, %p1040_p3 }
  0x23   : > { %1050 = shalt.err (!%p1047_p10)
}
  0x24   : > { %s1280_s24 = smov 64   ;;  %s1281_s25 = smov 4  }
  0x25   : > { %s1632_s3 = sld [smem:[#allocation20_spill]]  ;;  %s1062_s19 = scalar_lea.vmem %s296_s20, 256 }
  0x26   : > { %p1063_p1 = scmp.ne.s32.totalorder %s296_s20, %s1062_s19  ;;  %p1070_p2 = scmp.lt.s32.totalorder %s296_s20, %s296_s20 }
  0x27   : > { %p1071_p6 = scmp.lt.s32.totalorder %s1062_s19, %s1062_s19 }
  0x28   : > { %p1065_p13 = pnand %p1063_p1, %p1027_p12 }
  0x29   : > { %p1072_p5 = por %p1071_p6, %p1070_p2 }
  0x2a   : > { %p1066_p0 = pneg %p1065_p13 }
  0x2b   : > { %933 = dma.hbm_to_vmem [thread:$0]  (!%p1394_p11), %s1632_s3, 256, %s283_s17, [#allocation6], %s1280_s24, %s1280_s24, %s1281_s25  }
  0x2c   : > { %p1073_p3 = pnand %p1072_p5, %p1066_p0 }
  0x2e   : > { %1076 = shalt.err (!%p1073_p3)
}
  0x2f   : > { %s1633_s4 = sld [smem:[#allocation21_spill]]  ;;  %s1088_s17 = scalar_lea.vmem %s309_s22, 256 }
  0x30   : > { %p1089_p10 = scmp.ne.s32.totalorder %s309_s22, %s1088_s17  ;;  %p1096_p9 = scmp.lt.s32.totalorder %s309_s22, %s309_s22 }
  0x31   : > { %p1097_p13 = scmp.lt.s32.totalorder %s1088_s17, %s1088_s17 }
  0x32   : > { %p1091_p7 = pnand %p1089_p10, %p1027_p12 }
  0x33   : > { %p1098_p4 = por %p1097_p13, %p1096_p9 }
  0x34   : > { %p1092_p1 = pneg %p1091_p7 }
  0x35   : > { %936 = dma.hbm_to_vmem [thread:$0]  (!%p1394_p11), %s1633_s4, 256, %s296_s20, [#allocation6], %s1280_s24, %s1280_s24, %s1281_s25  }
  0x36   : > { %p1099_p2 = pnand %p1098_p4, %p1092_p1 }
  0x38   : > { %1102 = shalt.err (!%p1099_p2)
}
  0x39   : > { %s1634_s5 = sld [smem:[#allocation22_spill]]  ;;  %s51_s20 = sadd.s32 1, %s1263_s29 }
  0x3a   : > { %s42_s19 = sadd.s32 1, %s1271_s9  ;;  %p58_p4 = scmp.ne.s32.totalorder %s1263_s29, %s1259_s28 }
  0x3b   : > { %p44_p6 = scmp.ge.s32.totalorder %s42_s19, 2  ;;  %p59_p12 = scmp.eq.s32.totalorder %s1275_s10, 0 }
  0x3c   : > { %p1635_p0 = scmp.eq.s32.totalorder %s1364_s11, 1  ;;  %p957_p3 = scmp.lt.s32.totalorder %s1275_s10, 2 }
  0x3d   : > { %s1654_s19 = smov (%p44_p6, %s42_s19), 0  ;;  %p60_p10 = por %p59_p12, %p58_p4 }
  0x3e   : > { %p1431_p5 = por %p1635_p0, %p58_p4  ;;  %1637 = sst [smem:[#allocation19_spill]] %s1654_s19 }
  0x3f   : > { %939 = dma.hbm_to_vmem [thread:$0]  (!%p1394_p11), %s1634_s5, 256, %s309_s22, [#allocation9], %s1280_s24, %s1280_s24, %s1281_s25  }
  0x40   : > { %s322_s21 = sand.u32 1, %s1263_s29   ;;  %s46_s23 = ssub.s32 %s1271_s9, %s1654_s19 }
  0x41   : > { %p49_p7 = scmp.eq.s32.totalorder %s46_s23, 0  ;;  %s848_s22 = sshll.u32 %s322_s21, 3 }
  0x42   : > { %s849_s24 = sshll.u32 %s1271_s9, 7  ;;  %s326_s12 = scalar_lea.vmem [#allocation2], %s848_s22 }
  0x43   : > { %s1443_s25 = scalar_select %p49_p7, %s1263_s29, %s51_s20  }
  0x44   : > { %s332_s16 = scalar_lea.hbm %s1612_s0, %s849_s24  ;;  %s334_s3 = sshll.u32 %s326_s12, 4  ;;  %s335_s3 = int_to_ptr.vmem [resolvable:$true] %s334_s3 }
  0x45   : > { %p1450_p11 = pnand %p957_p3, %p60_p10  ;;  %s323_s5 = scalar_lea.sflag [#allocation3], %s322_s21 }
  0x46   : > { %s1116_s23 = scalar_lea.vmem %s335_s3, 128  ;;  %s1282_s20 = smov [#allocation2]  }
  0x47   : > { %p1105_p1 = pneg %p1450_p11  ;;  %p1117_p9 = scmp.ne.s32.totalorder %s335_s3, %s1116_s23 }
  0x48   : > { %s1121_s19 = sshll.u32 %s1282_s20, 4  ;;  %s1122_s19 = int_to_ptr.vmem [resolvable:$false] %s1121_s19 }
  0x49   : > { %p1119_p13 = pnand %p1117_p9, %p1105_p1  ;;  %s1123_s24 = scalar_lea.vmem %s1122_s19, 256 }
  0x4a   : > { %p1124_p4 = scmp.lt.s32.totalorder %s335_s3, %s1122_s19  ;;  %p1125_p6 = scmp.lt.s32.totalorder %s1123_s24, %s1116_s23 }
  0x4b   : > { %p1120_p2 = pneg %p1119_p13 }
  0x4c   : > { %p1126_p12 = por %p1125_p6, %p1124_p4 }
  0x4e   : > { %p1127_p0 = pnand %p1126_p12, %p1120_p2 }
  0x50   : > { %1130 = shalt.err (!%p1127_p0)
}
  0x51   : > { %943 = dma.hbm_to_vmem [thread:$0]  (!%p1450_p11), %s332_s16, 128, %s335_s3, %s323_s5  }
  0x52   : > { %343 = sbr.rel (%p1385_p8) target bundleno = 660 (0x294), region = 44  ;;  %s1461_s12 = sand.u32 (!%p1385_p8), 1, %s1259_s28  }
  0x53   : > { %s851_s21 = sshll.u32 (!%p1385_p8), %s1461_s12, 3  ;;  %s346_s22 = scalar_lea.sflag (!%p1385_p8), [#allocation3], %s1461_s12 }
  0x54   : > { %s349_s17 = scalar_lea.vmem (!%p1385_p8), [#allocation2], %s851_s21  ;;  %p1639_p3 = scmp.ne.s32.totalorder (!%p1385_p8), %s1628_s13, 0 }
  0x57   : > { %1234 = dma.done.wait (%p1639_p3), %s346_s22, 128  }
  0x58   : > { %1236 = vsyncadd (%p1639_p3), %s346_s22, 4294967168  ;;  %p1640_p10 = scmp.eq.s32.totalorder %s1364_s11, 0 }
  0x5a   : > { %1238 = dma.done.wait (%p1640_p10), [#allocation6], 512   ;;  %p1641_p7 = pmov %p1640_p10 }
  0x5c   : > { %1240 = vsyncadd (%p1641_p7), [#allocation6], 4294966784  ;;  %p1642_p8 = pmov %p1641_p7 }
  0x5d   : > { %p1643_p11 = pmov %p1641_p7 }
  0x5e   : > { %1242 = dma.done.wait (%p1642_p8), [#allocation9], 256  }
  0x5f   : > { %1244 = vsyncadd (%p1643_p11), [#allocation9], 4294967040  ;;  %vm406_vm0 = vcmask 261120   ;;  %v405_v0 = vld [vmem:[%s349_s17] sm:$0xff]  ;;  %v1017_v7 = vld [vmem:[#allocation5 + $0x8] sm:$0xff]   ;;  %v1283_v9 = vmov 0.0  }
  0x60   : > { %v407_v1 = vsel %vm406_vm0, %v405_v0, 0.0  ;;  %v1018_v8 = vld [vmem:[#allocation7 + $0x8] sm:$0xff]   ;;  %886 = vmatprep.subr.bf16.mxu0 %v1283_v9  ;;  %894 = vmatprep.subr.bf16.mxu1 %v1283_v9  ;;  %v1019_v10 = vld [vmem:[#allocation5] sm:$0xff]   ;;  %v1020_v11 = vld [vmem:[#allocation7] sm:$0xff]   ;;  %vm1284_vm1 = vmmov 0   ;;  %s1492_s15 = sshll.u32 %s1461_s12, 2 }
  0x61   : > { %408 = vadd.xlane.f32.xlu0 %v407_v1  ;;  %887 = vmatpush3.bf16.msra.mxu0 %v1017_v7  ;;  %v858_v16 = vld [vmem:[%s1613_s1] ss:$0 sm:$0xff]  ;;  %v1021_v21 = vld [vmem:[#allocation8 + $0x8] sm:$0xff]   ;;  %v1022_v23 = vld [vmem:[#allocation8] sm:$0xff]   ;;  %s621_s19 = sand.u32 1, %s1364_s11   ;;  %s1496_s26 = sshll.u32 %s1267_s30, 6 }
  0x62   : > { %895 = vmatpush3.bf16.msra.mxu1 %v1018_v8  ;;  %888 = vmatprep.subr.bf16.mxu0 %v1283_v9  ;;  %v859_v18 = vld [vmem:[%s1614_s2] ss:$0 sm:$0xff]  ;;  %s396_s16 = scalar_lea.vmem [#allocation11], %s1492_s15  ;;  %s389_s20 = scalar_lea.vmem [#allocation10], %s1492_s15  ;;  %vm498_vm2 = vcmask 257024  }
  0x63   : > { %896 = vmatprep.subr.bf16.mxu1 %v1283_v9  ;;  %890 = vmatprep.mubr.msk.bf16.mxu0 %vm1284_vm1, %v1283_v9  ;;  %s655_s23 = sshll.u32 %s396_s16, 4  ;;  %s641_s24 = sshll.u32 %s389_s20, 4  ;;  %s1506_s23 = int_to_ptr.vmem [resolvable:$true] %s655_s23  ;;  %s1514_s24 = int_to_ptr.vmem [resolvable:$true] %s641_s24 }
  0x64   : > { %898 = vmatprep.mubr.msk.bf16.mxu1 %vm1284_vm1, %v1283_v9  ;;  %s1504_s17 = scalar_lea.hbm %s1619_s7, %s1496_s26  ;;  %s1512_s3 = scalar_lea.hbm %s1618_s6, %s1496_s26 }
  0x65   : > { %889 = vmatpush3.bf16.msra.mxu0 %v1019_v10  ;;  %s1518_s4 = scalar_lea.sflag [#allocation12], %s621_s19  ;;  %s1131_s5 = scalar_lea.vmem %s1506_s23, 64 }
  0x66   : > { %897 = vmatpush3.bf16.msra.mxu1 %v1020_v11  ;;  %902 = vmatprep.subr.bf16.mxu0 %v1283_v9  ;;  %p1132_p1 = scmp.ne.s32.totalorder %s1506_s23, %s1131_s5  ;;  %s1285_s13 = smov [#allocation11]  }
  0x67   : > { %s1135_s21 = sshll.u32 %s1285_s13, 4  ;;  %s1136_s21 = int_to_ptr.vmem [resolvable:$false] %s1135_s21 }
  0x68   : > { %p1133_p9 = pnand %p1132_p1, %p1431_p5  ;;  %s1137_s22 = scalar_lea.vmem %s1136_s21, 128 }
  0x69   : > { %p1138_p2 = scmp.lt.s32.totalorder %s1506_s23, %s1136_s21  ;;  %p1139_p4 = scmp.lt.s32.totalorder %s1137_s22, %s1131_s5 }
  0x6a   : > { %p1134_p13 = pneg %p1133_p9 }
  0x6b   : > { %p1140_p6 = por %p1139_p4, %p1138_p2 }
  0x6d   : > { %p1141_p12 = pnand %p1140_p6, %p1134_p13 }
  0xea   : > { %v409_v2 = vpop.xlane.xlu0 %408 }
  0xeb   : > { %v411_v3 = vmul.f32 0.03125, %v409_v2 }
  0xed   : > { %v412_v4 = vsub.f32 %v405_v0, %v411_v3 }
  0xef   : > { %v413_v5 = vmul.f32 %v412_v4, %v412_v4 }
  0xf1   : > { %v414_v6 = vsel %vm406_vm0, %v413_v5, 0.0 }
  0xf2   : > { %415 = vadd.xlane.f32.xlu0 %v414_v6 }
 0x17b   : > { %v416_v12 = vpop.xlane.xlu0 %415 }
 0x17c   : > { %v417_v13 = vmul.f32 0.03125, %v416_v12 }
 0x17e   : > { %v418_v14 = vadd.f32 1e-05, %v417_v13 }
 0x180   : > { %1023 = vrsqrt.f32 %v418_v14 }
 0x18d   : > { %v1024_v15 = vpop.eup %1023 }
 0x18e   : > { %v420_v17 = vmul.f32 %v1024_v15, %v412_v4 }
 0x190   : > { %v428_v19 = vmul.f32 %v858_v16, %v420_v17 }
 0x192   : > { %v436_v20 = vadd.f32 %v859_v18, %v428_v19 }
 0x194   : > { %v437_v22 = vpack.c.bf16 %v436_v20, %v436_v20 }
 0x196   : > { %891 = vmatmul.mubr.msk.bf16.vlgmr.msra.gmra.mxu0 %vm406_vm0, %v437_v22  ;;  %899 = vmatmul.mubr.msk.bf16.vlgmr.msra.gmra.mxu1 %vm406_vm0, %v437_v22 }
 0x197   : > { %903 = vmatpush3.bf16.msra.mxu0 %v1021_v21  ;;  %906 = vmatprep.mubr.msk.bf16.mxu0 %vm1284_vm1, %v1283_v9 }
 0x198   : > { %904 = vmatprep.subr.bf16.mxu0 %v1283_v9 }
 0x19b   : > { %905 = vmatpush3.bf16.msra.mxu0 %v1022_v23 }
 0x19e   : > { %907 = vmatmul.mubr.msk.bf16.vlgmr.msra.gmra.mxu0 %vm406_vm0, %v437_v22 }
 0x256   : > { %v491_v24 = vpop.f32.mrf.mxu0  ;;  %v550_v25 = vpop.f32.mrf.mxu1 }
 0x257   : > { %v497_v26 = vpack.c.bf16 %v491_v24, %v491_v24  ;;  %v556_v27 = vpack.c.bf16 %v550_v25, %v550_v25 }
 0x258   : > { %v892_v28 = vpop.f32.mrf.mxu0  ;;  %v900_v29 = vpop.f32.mrf.mxu1 }
 0x259   : > { %557 = vst.msk [vmem:[%s396_s16] sm:$0xf] %vm498_vm2, %v556_v27  ;;  %499 = vst.msk [vmem:[%s389_s20] sm:$0xf] %vm498_vm2, %v497_v26 }
 0x25a   : > { %v494_v30 = vpop.f32.mrf.mxu0  ;;  %v553_v31 = vpop.f32.mrf.mxu1 }
 0x25b   : > { %1144 = shalt.err (!%p1141_p12)
}
 0x25c   : > { %s1145_s19 = scalar_lea.hbm %s1504_s17, 64  ;;  %s1149_s30 = scalar_lea.hbm %s1619_s7, 128 }
 0x25d   : > { %p1146_p0 = scmp.ne.s32.totalorder %s1504_s17, %s1145_s19  ;;  %p1150_p7 = scmp.lt.s32.totalorder %s1504_s17, %s1619_s7 }
 0x25e   : > { %p1151_p8 = scmp.lt.s32.totalorder %s1149_s30, %s1145_s19 }
 0x25f   : > { %p1147_p3 = pnand %p1146_p0, %p1431_p5 }
 0x260   : > { %p1152_p11 = por %p1151_p8, %p1150_p7 }
 0x261   : > { %p1148_p10 = pneg %p1147_p3 }
 0x263   : > { %p1153_p1 = pnand %p1152_p11, %p1148_p10 }
 0x265   : > { %1156 = shalt.err (!%p1153_p1)
}
 0x266   : > { %925 = dma.vmem_to_hbm [thread:$0]  (%p1431_p5), %s1506_s23, 64, %s1504_s17, %s1518_s4  }
 0x267   : > { %s617_s5 = scalar_lea.sflag [#allocation4], %s1461_s12  ;;  %s1157_s21 = scalar_lea.vmem %s1514_s24, 64 }
 0x268   : > { %p1158_p9 = scmp.ne.s32.totalorder %s1514_s24, %s1157_s21  ;;  %s1286_s22 = smov [#allocation10]  }
 0x269   : > { %s1161_s19 = sshll.u32 %s1286_s22, 4  ;;  %s1162_s19 = int_to_ptr.vmem [resolvable:$false] %s1161_s19 }
 0x26a   : > { %p1159_p13 = pnand %p1158_p9, %p1431_p5  ;;  %s1163_s16 = scalar_lea.vmem %s1162_s19, 128 }
 0x26b   : > { %p1164_p4 = scmp.lt.s32.totalorder %s1514_s24, %s1162_s19  ;;  %p1165_p6 = scmp.lt.s32.totalorder %s1163_s16, %s1157_s21 }
 0x26c   : > { %p1160_p2 = pneg %p1159_p13 }
 0x26d   : > { %p1166_p12 = por %p1165_p6, %p1164_p4 }
 0x26f   : > { %p1167_p0 = pnand %p1166_p12, %p1160_p2 }
 0x271   : > { %1170 = shalt.err (!%p1167_p0)
}
 0x272   : > { %s1171_s23 = scalar_lea.hbm %s1512_s3, 64  ;;  %s1175_s20 = scalar_lea.hbm %s1618_s6, 128 }
 0x273   : > { %p1172_p3 = scmp.ne.s32.totalorder %s1512_s3, %s1171_s23  ;;  %p1176_p8 = scmp.lt.s32.totalorder %s1512_s3, %s1618_s6 }
 0x274   : > { %p1177_p11 = scmp.lt.s32.totalorder %s1175_s20, %s1171_s23 }
 0x275   : > { %p1173_p10 = pnand %p1172_p3, %p1431_p5 }
 0x276   : > { %p1178_p1 = por %p1177_p11, %p1176_p8 }
 0x277   : > { %p1174_p7 = pneg %p1173_p10 }
 0x279   : > { %p1179_p9 = pnand %p1178_p1, %p1174_p7 }
 0x27b   : > { %1182 = shalt.err (!%p1179_p9)
}
 0x27c   : > { %924 = dma.vmem_to_hbm [thread:$0]  (%p1431_p5), %s1514_s24, 64, %s1512_s3, %s617_s5   ;;  %v893_v32 = vpop.f32.mrf.mxu0  ;;  %v901_v33 = vpop.f32.mrf.mxu1 }
 0x27d   : > { %s403_s13 = scalar_lea.vmem [#allocation13], %s1492_s15  ;;  %s1567_s16 = scalar_lea.hbm %s1620_s8, %s1496_s26 }
 0x27e   : > { %s669_s21 = sshll.u32 %s403_s13, 4  ;;  %v608_v34 = vpop.f32.mrf.mxu0  ;;  %s1287_s24 = smov [#allocation13]   ;;  %s670_s21 = int_to_ptr.vmem [resolvable:$true] %s669_s21 }
 0x27f   : > { %v614_v35 = vpack.c.bf16 %v608_v34, %v608_v34  ;;  %s1183_s23 = scalar_lea.vmem %s670_s21, 64  ;;  %s1187_s15 = sshll.u32 %s1287_s24, 4  ;;  %s1188_s15 = int_to_ptr.vmem [resolvable:$false] %s1187_s15 }
 0x280   : > { %v908_v36 = vpop.f32.mrf.mxu0  ;;  %p1184_p13 = scmp.ne.s32.totalorder %s670_s21, %s1183_s23  ;;  %s1189_s3 = scalar_lea.vmem %s1188_s15, 128 }
 0x281   : > { %615 = vst.msk [vmem:[%s403_s13] sm:$0xf] %vm498_vm2, %v614_v35  ;;  %p1190_p6 = scmp.lt.s32.totalorder %s670_s21, %s1188_s15  ;;  %p1191_p12 = scmp.lt.s32.totalorder %s1189_s3, %s1183_s23 }
 0x282   : > { %v611_v37 = vpop.f32.mrf.mxu0  ;;  %p1185_p2 = pnand %p1184_p13, %p1431_p5 }
 0x283   : > { %p1192_p0 = por %p1191_p12, %p1190_p6 }
 0x284   : > { %p1186_p4 = pneg %p1185_p2 }
 0x286   : > { %p1193_p3 = pnand %p1192_p0, %p1186_p4 }
 0x288   : > { %1196 = shalt.err (!%p1193_p3)
}
 0x289   : > { %s1197_s26 = scalar_lea.hbm %s1567_s16, 64  ;;  %s1201_s17 = scalar_lea.hbm %s1620_s8, 128 }
 0x28a   : > { %p1198_p10 = scmp.ne.s32.totalorder %s1567_s16, %s1197_s26  ;;  %p1202_p11 = scmp.lt.s32.totalorder %s1567_s16, %s1620_s8 }
 0x28b   : > { %p1203_p1 = scmp.lt.s32.totalorder %s1201_s17, %s1197_s26 }
 0x28c   : > { %p1199_p7 = pnand %p1198_p10, %p1431_p5 }
 0x28d   : > { %p1204_p9 = por %p1203_p1, %p1202_p11 }
 0x28e   : > { %p1200_p8 = pneg %p1199_p7 }
 0x290   : > { %p1205_p13 = pnand %p1204_p9, %p1200_p8 }
 0x292   : > { %1208 = shalt.err (!%p1205_p13)
}
 0x293   : > { %926 = dma.vmem_to_hbm [thread:$0]  (%p1431_p5), %s670_s21, 64, %s1567_s16, %s1518_s4   ;;  %v909_v38 = vpop.f32.mrf.mxu0 }
 0x294 PF: > { %s681_s11 = sand.u32 1, %s1255_s27   ;;  %p1644_p2 = scmp.ne.s32.totalorder %s1629_s14, 0 }
 0x295   : > { %p1645_p4 = scmp.ge.s32.totalorder %s1275_s10, 2  ;;  %s682_s13 = scalar_lea.sflag [#allocation4], %s681_s11 }
 0x297   : > { %p945_p6 = pnand %p1645_p4, %p1644_p2 }
 0x299   : > { %p946_p12 = pneg %p945_p6 }
 0x29b   : > { %1246 = dma.done.wait (%p946_p12), %s682_s13, 64  }
 0x29c   : > { %1248 = vsyncadd (%p946_p12), %s682_s13, 4294967232  ;;  %s1646_s22 = sadd.s32 4294967294, %s1275_s10  }
 0x29d   : > { %s690_s19 = sand.u32 1, %s1646_s22  }
 0x29e   : > { %s691_s18 = scalar_lea.sflag [#allocation12], %s690_s19 }
 0x29f   : > { %1250 = dma.done.wait (%p946_p12), %s691_s18, 128  }
 0x2a0   : > { %1252 = vsyncadd (%p946_p12), %s691_s18, 4294967168  ;;  %s30_s10 = sadd.s32 1, %s1275_s10   ;;  %s1647_s14 = sld [smem:[#allocation19_spill]] }
 0x2a1   : > { %p27_p5 = scmp.ge.s32.totalorder %s30_s10, 4   ;;  %s1648_s27 = smov %s1259_s28 }
 0x2a2   : > { %s1649_s28 = smov %s1263_s29  ;;  %s1650_s29 = smov %s1443_s25 }
 0x2a3   : > { %s1651_s30 = smov %s1271_s9  ;;  %29 = sbr.rel (!%p27_p5) target bundleno = 14 (0xe), region = 133 }
 0x2a6   : > { %s1652_s9 = smov %s1647_s14 }
 0x2a8   :  { %705 = vsyncpa [#allocation3], 1 }
 0x2a9   :  { %707 = vsyncpa [#allocation3 + $0x1], 1 }
 0x2aa   :  { %708 = vsyncpa [#allocation6], 1 }
 0x2ab   :  { %709 = vsyncpa [#allocation9], 1 }
 0x2ac   :  { %710 = vsyncpa [#allocation4], 1 }
 0x2ad   :  { %712 = vsyncpa [#allocation4 + $0x1], 1 }
 0x2ae   :  { %713 = vsyncpa [#allocation12], 1 }
 0x2af   :  { %715 = vsyncpa [#allocation12 + $0x1], 1 }

// kernel: tpu_custom_call.1
= control target key start
LH: loop header
LB: loop body
LE: loop exit
PB: predicated region body
PF: predicated region fallthrough
CT: control target
= control target key end

     0   :  { %s1612_s0 = inlined_call_operand.hbm [shape: f32[2,8,32], index: 0, kind: input, shape index: {}]   ;;  %s1613_s1 = inlined_call_operand.vmem [shape: f32[1,32], index: 1, kind: input, shape index: {}]   ;;  %s1614_s2 = inlined_call_operand.vmem [shape: f32[1,32], index: 2, kind: input, shape index: {}]   ;;  %s1615_s3 = inlined_call_operand.hbm [shape: bf16[32,32], index: 3, kind: input, shape index: {}]   ;;  %s1616_s4 = inlined_call_operand.hbm [shape: bf16[32,32], index: 4, kind: input, shape index: {}]   ;;  %s1617_s5 = inlined_call_operand.hbm [shape: bf16[32,32], index: 5, kind: input, shape index: {}]   ;;  %s1618_s6 = inlined_call_operand.hbm [shape: bf16[2,8,32], index: 6, kind: output, shape index: {0}]   ;;  %s1619_s7 = inlined_call_operand.hbm [shape: bf16[2,8,32], index: 7, kind: output, shape index: {1}]   ;;  %s1620_s8 = inlined_call_operand.hbm [shape: bf16[2,8,32], index: 8, kind: output, shape index: {2}]  }
   0x1   :  { %1625 = sst [smem:[#allocation20_spill]] %s1615_s3 }
   0x2   :  { %1626 = sst [smem:[#allocation21_spill]] %s1616_s4 }
   0x3   :  { %1627 = sst [smem:[#allocation22_spill]] %s1617_s5 }
   0x4   :  { %14 = vsyncpa [#allocation3], 0 }
   0x5   :  { %16 = vsyncpa [#allocation3 + $0x1], 0 }
   0x6   :  { %17 = vsyncpa [#allocation6], 0 }
   0x7   :  { %18 = vsyncpa [#allocation9], 0 }
   0x8   :  { %19 = vsyncpa [#allocation4], 0 }
   0x9   :  { %21 = vsyncpa [#allocation4 + $0x1], 0 }
   0xa   :  { %22 = vsyncpa [#allocation12], 0 }
   0xb   :  { %24 = vsyncpa [#allocation12 + $0x1], 0  ;;  %s1333_s27 = smov 0   ;;  %s1335_s28 = smov 0  }
   0xc   :  { %s1337_s29 = smov 0   ;;  %s1339_s30 = smov 0  }
   0xd   :  { %s1341_s9 = smov 0   ;;  %s1343_s10 = smov 0  }
   0xe LB: > { %s1364_s11 = sadd.s32 4294967295, %s1275_s10   ;;  %s1623_s12 = sadd.s32 4294967294, %s1275_s10   ;;  %s1275_s10 = sphi %s1343_s10, %s30_s10   ;;  %s1271_s9 = sphi %s1341_s9, %s1652_s9   ;;  %s1267_s30 = sphi %s1339_s30, %s1651_s30   ;;  %s1263_s29 = sphi %s1337_s29, %s1650_s29   ;;  %s1259_s28 = sphi %s1335_s28, %s1649_s28   ;;  %s1255_s27 = sphi %s1333_s27, %s1648_s27  }
   0xf   : > { %p64_p0 = scmp.ne.s32.totalorder %s1259_s28, %s1255_s27  ;;  %p1621_p1 = scmp.eq.s32.totalorder %s1364_s11, 0 }
  0x10   : > { %p201_p3 = scmp.eq.s32.totalorder %s1623_s12, 1  ;;  %p843_p5 = scmp.ge.s32.totalorder %s1275_s10, 1 }
  0x11   : > { %p1375_p4 = por %p1621_p1, %p64_p0  ;;  %p264_p7 = scmp.lt.s32.totalorder %s1275_s10, 3 }
  0x12   : > { %p1380_p6 = por %p201_p3, %p64_p0  ;;  %s1277_s16 = smov [#allocation5]  }
  0x13   : > { %s1628_s13 = scalar_select %p1375_p4, 1, 0 }
  0x14   : > { %s1629_s14 = scalar_select %p1380_p6, 1, 0 }
  0x15   : > { %p1385_p8 = pnand %p843_p5, %p264_p7  ;;  %s282_s17 = sshll.u32 %s1277_s16, 4  ;;  %s283_s17 = int_to_ptr.vmem [resolvable:$true] %s282_s17 }
  0x16   : > { %s1278_s19 = smov [#allocation7]   ;;  %s1279_s21 = smov [#allocation8]  }
  0x17   : > { %p930_p9 = pneg %p1385_p8  ;;  %s295_s20 = sshll.u32 %s1278_s19, 4  ;;  %s296_s20 = int_to_ptr.vmem [resolvable:$true] %s295_s20 }
  0x18   : > { %s308_s22 = sshll.u32 %s1279_s21, 4  ;;  %s1036_s23 = scalar_lea.vmem %s283_s17, 256  ;;  %s309_s22 = int_to_ptr.vmem [resolvable:$true] %s308_s22 }
  0x19   : > { %p1394_p11 = pnand %p930_p9, %p1621_p1  ;;  %p1037_p13 = scmp.ne.s32.totalorder %s283_s17, %s1036_s23 }
  0x1a   : > { %p1044_p5 = scmp.lt.s32.totalorder %s283_s17, %s283_s17  ;;  %p1045_p7 = scmp.lt.s32.totalorder %s1036_s23, %s1036_s23 }
  0x1b   : > { %p1027_p12 = pneg %p1394_p11 }
  0x1c   : > { %p1046_p9 = por %p1045_p7, %p1044_p5 }
  0x1d   : > { %p1039_p0 = pnand %p1037_p13, %p1027_p12 }
  0x1f   : > { %p1040_p3 = pneg %p1039_p0 }
  0x21   : > { %p1047_p10 = pnand %p1046_p9, %p1040_p3 }
  0x23   : > { %1050 = shalt.err (!%p1047_p10)
}
  0x24   : > { %s1280_s24 = smov 64   ;;  %s1281_s25 = smov 4  }
  0x25   : > { %s1632_s3 = sld [smem:[#allocation20_spill]]  ;;  %s1062_s19 = scalar_lea.vmem %s296_s20, 256 }
  0x26   : > { %p1063_p1 = scmp.ne.s32.totalorder %s296_s20, %s1062_s19  ;;  %p1070_p2 = scmp.lt.s32.totalorder %s296_s20, %s296_s20 }
  0x27   : > { %p1071_p6 = scmp.lt.s32.totalorder %s1062_s19, %s1062_s19 }
  0x28   : > { %p1065_p13 = pnand %p1063_p1, %p1027_p12 }
  0x29   : > { %p1072_p5 = por %p1071_p6, %p1070_p2 }
  0x2a   : > { %p1066_p0 = pneg %p1065_p13 }
  0x2b   : > { %933 = dma.hbm_to_vmem [thread:$0]  (!%p1394_p11), %s1632_s3, 256, %s283_s17, [#allocation6], %s1280_s24, %s1280_s24, %s1281_s25  }
  0x2c   : > { %p1073_p3 = pnand %p1072_p5, %p1066_p0 }
  0x2e   : > { %1076 = shalt.err (!%p1073_p3)
}
  0x2f   : > { %s1633_s4 = sld [smem:[#allocation21_spill]]  ;;  %s1088_s17 = scalar_lea.vmem %s309_s22, 256 }
  0x30   : > { %p1089_p10 = scmp.ne.s32.totalorder %s309_s22, %s1088_s17  ;;  %p1096_p9 = scmp.lt.s32.totalorder %s309_s22, %s309_s22 }
  0x31   : > { %p1097_p13 = scmp.lt.s32.totalorder %s1088_s17, %s1088_s17 }
  0x32   : > { %p1091_p7 = pnand %p1089_p10, %p1027_p12 }
  0x33   : > { %p1098_p4 = por %p1097_p13, %p1096_p9 }
  0x34   : > { %p1092_p1 = pneg %p1091_p7 }
  0x35   : > { %936 = dma.hbm_to_vmem [thread:$0]  (!%p1394_p11), %s1633_s4, 256, %s296_s20, [#allocation6], %s1280_s24, %s1280_s24, %s1281_s25  }
  0x36   : > { %p1099_p2 = pnand %p1098_p4, %p1092_p1 }
  0x38   : > { %1102 = shalt.err (!%p1099_p2)
}
  0x39   : > { %s1634_s5 = sld [smem:[#allocation22_spill]]  ;;  %s51_s20 = sadd.s32 1, %s1263_s29 }
  0x3a   : > { %s42_s19 = sadd.s32 1, %s1271_s9  ;;  %p58_p4 = scmp.ne.s32.totalorder %s1263_s29, %s1259_s28 }
  0x3b   : > { %p44_p6 = scmp.ge.s32.totalorder %s42_s19, 2  ;;  %p59_p12 = scmp.eq.s32.totalorder %s1275_s10, 0 }
  0x3c   : > { %p1635_p0 = scmp.eq.s32.totalorder %s1364_s11, 1  ;;  %p957_p3 = scmp.lt.s32.totalorder %s1275_s10, 2 }
  0x3d   : > { %s1654_s19 = smov (%p44_p6, %s42_s19), 0  ;;  %p60_p10 = por %p59_p12, %p58_p4 }
  0x3e   : > { %p1431_p5 = por %p1635_p0, %p58_p4  ;;  %1637 = sst [smem:[#allocation19_spill]] %s1654_s19 }
  0x3f   : > { %939 = dma.hbm_to_vmem [thread:$0]  (!%p1394_p11), %s1634_s5, 256, %s309_s22, [#allocation9], %s1280_s24, %s1280_s24, %s1281_s25  }
  0x40   : > { %s322_s21 = sand.u32 1, %s1263_s29   ;;  %s46_s23 = ssub.s32 %s1271_s9, %s1654_s19 }
  0x41   : > { %p49_p7 = scmp.eq.s32.totalorder %s46_s23, 0  ;;  %s848_s22 = sshll.u32 %s322_s21, 3 }
  0x42   : > { %s849_s24 = sshll.u32 %s1271_s9, 7  ;;  %s326_s12 = scalar_lea.vmem [#allocation2], %s848_s22 }
  0x43   : > { %s1443_s25 = scalar_select %p49_p7, %s1263_s29, %s51_s20  }
  0x44   : > { %s332_s16 = scalar_lea.hbm %s1612_s0, %s849_s24  ;;  %s334_s3 = sshll.u32 %s326_s12, 4  ;;  %s335_s3 = int_to_ptr.vmem [resolvable:$true] %s334_s3 }
  0x45   : > { %p1450_p11 = pnand %p957_p3, %p60_p10  ;;  %s323_s5 = scalar_lea.sflag [#allocation3], %s322_s21 }
  0x46   : > { %s1116_s23 = scalar_lea.vmem %s335_s3, 128  ;;  %s1282_s20 = smov [#allocation2]  }
  0x47   : > { %p1105_p1 = pneg %p1450_p11  ;;  %p1117_p9 = scmp.ne.s32.totalorder %s335_s3, %s1116_s23 }
  0x48   : > { %s1121_s19 = sshll.u32 %s1282_s20, 4  ;;  %s1122_s19 = int_to_ptr.vmem [resolvable:$false] %s1121_s19 }
  0x49   : > { %p1119_p13 = pnand %p1117_p9, %p1105_p1  ;;  %s1123_s24 = scalar_lea.vmem %s1122_s19, 256 }
  0x4a   : > { %p1124_p4 = scmp.lt.s32.totalorder %s335_s3, %s1122_s19  ;;  %p1125_p6 = scmp.lt.s32.totalorder %s1123_s24, %s1116_s23 }
  0x4b   : > { %p1120_p2 = pneg %p1119_p13 }
  0x4c   : > { %p1126_p12 = por %p1125_p6, %p1124_p4 }
  0x4e   : > { %p1127_p0 = pnand %p1126_p12, %p1120_p2 }
  0x50   : > { %1130 = shalt.err (!%p1127_p0)
}
  0x51   : > { %943 = dma.hbm_to_vmem [thread:$0]  (!%p1450_p11), %s332_s16, 128, %s335_s3, %s323_s5  }
  0x52   : > { %343 = sbr.rel (%p1385_p8) target bundleno = 660 (0x294), region = 44  ;;  %s1461_s12 = sand.u32 (!%p1385_p8), 1, %s1259_s28  }
  0x53   : > { %s851_s21 = sshll.u32 (!%p1385_p8), %s1461_s12, 3  ;;  %s346_s22 = scalar_lea.sflag (!%p1385_p8), [#allocation3], %s1461_s12 }
  0x54   : > { %s349_s17 = scalar_lea.vmem (!%p1385_p8), [#allocation2], %s851_s21  ;;  %p1639_p3 = scmp.ne.s32.totalorder (!%p1385_p8), %s1628_s13, 0 }
  0x57   : > { %1234 = dma.done.wait (%p1639_p3), %s346_s22, 128  }
  0x58   : > { %1236 = vsyncadd (%p1639_p3), %s346_s22, 4294967168  ;;  %p1640_p10 = scmp.eq.s32.totalorder %s1364_s11, 0 }
  0x5a   : > { %1238 = dma.done.wait (%p1640_p10), [#allocation6], 512   ;;  %p1641_p7 = pmov %p1640_p10 }
  0x5c   : > { %1240 = vsyncadd (%p1641_p7), [#allocation6], 4294966784  ;;  %p1642_p8 = pmov %p1641_p7 }
  0x5d   : > { %p1643_p11 = pmov %p1641_p7 }
  0x5e   : > { %1242 = dma.done.wait (%p1642_p8), [#allocation9], 256  }
  0x5f   : > { %1244 = vsyncadd (%p1643_p11), [#allocation9], 4294967040  ;;  %vm406_vm0 = vcmask 261120   ;;  %v405_v0 = vld [vmem:[%s349_s17] sm:$0xff]  ;;  %v1017_v7 = vld [vmem:[#allocation5 + $0x8] sm:$0xff]   ;;  %v1283_v9 = vmov 0.0  }
  0x60   : > { %v407_v1 = vsel %vm406_vm0, %v405_v0, 0.0  ;;  %v1018_v8 = vld [vmem:[#allocation7 + $0x8] sm:$0xff]   ;;  %886 = vmatprep.subr.bf16.mxu0 %v1283_v9  ;;  %894 = vmatprep.subr.bf16.mxu1 %v1283_v9  ;;  %v1019_v10 = vld [vmem:[#allocation5] sm:$0xff]   ;;  %v1020_v11 = vld [vmem:[#allocation7] sm:$0xff]   ;;  %vm1284_vm1 = vmmov 0   ;;  %s1492_s15 = sshll.u32 %s1461_s12, 2 }
  0x61   : > { %408 = vadd.xlane.f32.xlu0 %v407_v1  ;;  %887 = vmatpush3.bf16.msra.mxu0 %v1017_v7  ;;  %v858_v16 = vld [vmem:[%s1613_s1] ss:$0 sm:$0xff]  ;;  %v1021_v21 = vld [vmem:[#allocation8 + $0x8] sm:$0xff]   ;;  %v1022_v23 = vld [vmem:[#allocation8] sm:$0xff]   ;;  %s621_s19 = sand.u32 1, %s1364_s11   ;;  %s1496_s26 = sshll.u32 %s1267_s30, 6 }
  0x62   : > { %895 = vmatpush3.bf16.msra.mxu1 %v1018_v8  ;;  %888 = vmatprep.subr.bf16.mxu0 %v1283_v9  ;;  %v859_v18 = vld [vmem:[%s1614_s2] ss:$0 sm:$0xff]  ;;  %s396_s16 = scalar_lea.vmem [#allocation11], %s1492_s15  ;;  %s389_s20 = scalar_lea.vmem [#allocation10], %s1492_s15  ;;  %vm498_vm2 = vcmask 257024  }
  0x63   : > { %896 = vmatprep.subr.bf16.mxu1 %v1283_v9  ;;  %890 = vmatprep.mubr.msk.bf16.mxu0 %vm1284_vm1, %v1283_v9  ;;  %s655_s23 = sshll.u32 %s396_s16, 4  ;;  %s641_s24 = sshll.u32 %s389_s20, 4  ;;  %s1506_s23 = int_to_ptr.vmem [resolvable:$true] %s655_s23  ;;  %s1514_s24 = int_to_ptr.vmem [resolvable:$true] %s641_s24 }
  0x64   : > { %898 = vmatprep.mubr.msk.bf16.mxu1 %vm1284_vm1, %v1283_v9  ;;  %s1504_s17 = scalar_lea.hbm %s1619_s7, %s1496_s26  ;;  %s1512_s3 = scalar_lea.hbm %s1618_s6, %s1496_s26 }
  0x65   : > { %889 = vmatpush3.bf16.msra.mxu0 %v1019_v10  ;;  %s1518_s4 = scalar_lea.sflag [#allocation12], %s621_s19  ;;  %s1131_s5 = scalar_lea.vmem %s1506_s23, 64 }
  0x66   : > { %897 = vmatpush3.bf16.msra.mxu1 %v1020_v11  ;;  %902 = vmatprep.subr.bf16.mxu0 %v1283_v9  ;;  %p1132_p1 = scmp.ne.s32.totalorder %s1506_s23, %s1131_s5  ;;  %s1285_s13 = smov [#allocation11]  }
  0x67   : > { %s1135_s21 = sshll.u32 %s1285_s13, 4  ;;  %s1136_s21 = int_to_ptr.vmem [resolvable:$false] %s1135_s21 }
  0x68   : > { %p1133_p9 = pnand %p1132_p1, %p1431_p5  ;;  %s1137_s22 = scalar_lea.vmem %s1136_s21, 128 }
  0x69   : > { %p1138_p2 = scmp.lt.s32.totalorder %s1506_s23, %s1136_s21  ;;  %p1139_p4 = scmp.lt.s32.totalorder %s1137_s22, %s1131_s5 }
  0x6a   : > { %p1134_p13 = pneg %p1133_p9 }
  0x6b   : > { %p1140_p6 = por %p1139_p4, %p1138_p2 }
  0x6d   : > { %p1141_p12 = pnand %p1140_p6, %p1134_p13 }
  0xea   : > { %v409_v2 = vpop.xlane.xlu0 %408 }
  0xeb   : > { %v411_v3 = vmul.f32 0.03125, %v409_v2 }
  0xed   : > { %v412_v4 = vsub.f32 %v405_v0, %v411_v3 }
  0xef   : > { %v413_v5 = vmul.f32 %v412_v4, %v412_v4 }
  0xf1   : > { %v414_v6 = vsel %vm406_vm0, %v413_v5, 0.0 }
  0xf2   : > { %415 = vadd.xlane.f32.xlu0 %v414_v6 }
 0x17b   : > { %v416_v12 = vpop.xlane.xlu0 %415 }
 0x17c   : > { %v417_v13 = vmul.f32 0.03125, %v416_v12 }
 0x17e   : > { %v418_v14 = vadd.f32 1e-05, %v417_v13 }
 0x180   : > { %1023 = vrsqrt.f32 %v418_v14 }
 0x18d   : > { %v1024_v15 = vpop.eup %1023 }
 0x18e   : > { %v420_v17 = vmul.f32 %v1024_v15, %v412_v4 }
 0x190   : > { %v428_v19 = vmul.f32 %v858_v16, %v420_v17 }
 0x192   : > { %v436_v20 = vadd.f32 %v859_v18, %v428_v19 }
 0x194   : > { %v437_v22 = vpack.c.bf16 %v436_v20, %v436_v20 }
 0x196   : > { %891 = vmatmul.mubr.msk.bf16.vlgmr.msra.gmra.mxu0 %vm406_vm0, %v437_v22  ;;  %899 = vmatmul.mubr.msk.bf16.vlgmr.msra.gmra.mxu1 %vm406_vm0, %v437_v22 }
 0x197   : > { %903 = vmatpush3.bf16.msra.mxu0 %v1021_v21  ;;  %906 = vmatprep.mubr.msk.bf16.mxu0 %vm1284_vm1, %v1283_v9 }
 0x198   : > { %904 = vmatprep.subr.bf16.mxu0 %v1283_v9 }
 0x19b   : > { %905 = vmatpush3.bf16.msra.mxu0 %v1022_v23 }
 0x19e   : > { %907 = vmatmul.mubr.msk.bf16.vlgmr.msra.gmra.mxu0 %vm406_vm0, %v437_v22 }
 0x256   : > { %v491_v24 = vpop.f32.mrf.mxu0  ;;  %v550_v25 = vpop.f32.mrf.mxu1 }
 0x257   : > { %v497_v26 = vpack.c.bf16 %v491_v24, %v491_v24  ;;  %v556_v27 = vpack.c.bf16 %v550_v25, %v550_v25 }
 0x258   : > { %v892_v28 = vpop.f32.mrf.mxu0  ;;  %v900_v29 = vpop.f32.mrf.mxu1 }
 0x259   : > { %557 = vst.msk [vmem:[%s396_s16] sm:$0xf] %vm498_vm2, %v556_v27  ;;  %499 = vst.msk [vmem:[%s389_s20] sm:$0xf] %vm498_vm2, %v497_v26 }
 0x25a   : > { %v494_v30 = vpop.f32.mrf.mxu0  ;;  %v553_v31 = vpop.f32.mrf.mxu1 }
 0x25b   : > { %1144 = shalt.err (!%p1141_p12)
}
 0x25c   : > { %s1145_s19 = scalar_lea.hbm %s1504_s17, 64  ;;  %s1149_s30 = scalar_lea.hbm %s1619_s7, 128 }
 0x25d   : > { %p1146_p0 = scmp.ne.s32.totalorder %s1504_s17, %s1145_s19  ;;  %p1150_p7 = scmp.lt.s32.totalorder %s1504_s17, %s1619_s7 }
 0x25e   : > { %p1151_p8 = scmp.lt.s32.totalorder %s1149_s30, %s1145_s19 }
 0x25f   : > { %p1147_p3 = pnand %p1146_p0, %p1431_p5 }
 0x260   : > { %p1152_p11 = por %p1151_p8, %p1150_p7 }
 0x261   : > { %p1148_p10 = pneg %p1147_p3 }
 0x263   : > { %p1153_p1 = pnand %p1152_p11, %p1148_p10 }
 0x265   : > { %1156 = shalt.err (!%p1153_p1)
}
 0x266   : > { %925 = dma.vmem_to_hbm [thread:$0]  (%p1431_p5), %s1506_s23, 64, %s1504_s17, %s1518_s4  }
 0x267   : > { %s617_s5 = scalar_lea.sflag [#allocation4], %s1461_s12  ;;  %s1157_s21 = scalar_lea.vmem %s1514_s24, 64 }
 0x268   : > { %p1158_p9 = scmp.ne.s32.totalorder %s1514_s24, %s1157_s21  ;;  %s1286_s22 = smov [#allocation10]  }
 0x269   : > { %s1161_s19 = sshll.u32 %s1286_s22, 4  ;;  %s1162_s19 = int_to_ptr.vmem [resolvable:$false] %s1161_s19 }
 0x26a   : > { %p1159_p13 = pnand %p1158_p9, %p1431_p5  ;;  %s1163_s16 = scalar_lea.vmem %s1162_s19, 128 }
 0x26b   : > { %p1164_p4 = scmp.lt.s32.totalorder %s1514_s24, %s1162_s19  ;;  %p1165_p6 = scmp.lt.s32.totalorder %s1163_s16, %s1157_s21 }
 0x26c   : > { %p1160_p2 = pneg %p1159_p13 }
 0x26d   : > { %p1166_p12 = por %p1165_p6, %p1164_p4 }
 0x26f   : > { %p1167_p0 = pnand %p1166_p12, %p1160_p2 }
 0x271   : > { %1170 = shalt.err (!%p1167_p0)
}
 0x272   : > { %s1171_s23 = scalar_lea.hbm %s1512_s3, 64  ;;  %s1175_s20 = scalar_lea.hbm %s1618_s6, 128 }
 0x273   : > { %p1172_p3 = scmp.ne.s32.totalorder %s1512_s3, %s1171_s23  ;;  %p1176_p8 = scmp.lt.s32.totalorder %s1512_s3, %s1618_s6 }
 0x274   : > { %p1177_p11 = scmp.lt.s32.totalorder %s1175_s20, %s1171_s23 }
 0x275   : > { %p1173_p10 = pnand %p1172_p3, %p1431_p5 }
 0x276   : > { %p1178_p1 = por %p1177_p11, %p1176_p8 }
 0x277   : > { %p1174_p7 = pneg %p1173_p10 }
 0x279   : > { %p1179_p9 = pnand %p1178_p1, %p1174_p7 }
 0x27b   : > { %1182 = shalt.err (!%p1179_p9)
}
 0x27c   : > { %924 = dma.vmem_to_hbm [thread:$0]  (%p1431_p5), %s1514_s24, 64, %s1512_s3, %s617_s5   ;;  %v893_v32 = vpop.f32.mrf.mxu0  ;;  %v901_v33 = vpop.f32.mrf.mxu1 }
 0x27d   : > { %s403_s13 = scalar_lea.vmem [#allocation13], %s1492_s15  ;;  %s1567_s16 = scalar_lea.hbm %s1620_s8, %s1496_s26 }
 0x27e   : > { %s669_s21 = sshll.u32 %s403_s13, 4  ;;  %v608_v34 = vpop.f32.mrf.mxu0  ;;  %s1287_s24 = smov [#allocation13]   ;;  %s670_s21 = int_to_ptr.vmem [resolvable:$true] %s669_s21 }
 0x27f   : > { %v614_v35 = vpack.c.bf16 %v608_v34, %v608_v34  ;;  %s1183_s23 = scalar_lea.vmem %s670_s21, 64  ;;  %s1187_s15 = sshll.u32 %s1287_s24, 4  ;;  %s1188_s15 = int_to_ptr.vmem [resolvable:$false] %s1187_s15 }
 0x280   : > { %v908_v36 = vpop.f32.mrf.mxu0  ;;  %p1184_p13 = scmp.ne.s32.totalorder %s670_s21, %s1183_s23  ;;  %s1189_s3 = scalar_lea.vmem %s1188_s15, 128 }
 0x281   : > { %615 = vst.msk [vmem:[%s403_s13] sm:$0xf] %vm498_vm2, %v614_v35  ;;  %p1190_p6 = scmp.lt.s32.totalorder %s670_s21, %s1188_s15  ;;  %p1191_p12 = scmp.lt.s32.totalorder %s1189_s3, %s1183_s23 }
 0x282   : > { %v611_v37 = vpop.f32.mrf.mxu0  ;;  %p1185_p2 = pnand %p1184_p13, %p1431_p5 }
 0x283   : > { %p1192_p0 = por %p1191_p12, %p1190_p6 }
 0x284   : > { %p1186_p4 = pneg %p1185_p2 }
 0x286   : > { %p1193_p3 = pnand %p1192_p0, %p1186_p4 }
 0x288   : > { %1196 = shalt.err (!%p1193_p3)
}
 0x289   : > { %s1197_s26 = scalar_lea.hbm %s1567_s16, 64  ;;  %s1201_s17 = scalar_lea.hbm %s1620_s8, 128 }
 0x28a   : > { %p1198_p10 = scmp.ne.s32.totalorder %s1567_s16, %s1197_s26  ;;  %p1202_p11 = scmp.lt.s32.totalorder %s1567_s16, %s1620_s8 }
 0x28b   : > { %p1203_p1 = scmp.lt.s32.totalorder %s1201_s17, %s1197_s26 }
 0x28c   : > { %p1199_p7 = pnand %p1198_p10, %p1431_p5 }
 0x28d   : > { %p1204_p9 = por %p1203_p1, %p1202_p11 }
 0x28e   : > { %p1200_p8 = pneg %p1199_p7 }
 0x290   : > { %p1205_p13 = pnand %p1204_p9, %p1200_p8 }
 0x292   : > { %1208 = shalt.err (!%p1205_p13)
}
 0x293   : > { %926 = dma.vmem_to_hbm [thread:$0]  (%p1431_p5), %s670_s21, 64, %s1567_s16, %s1518_s4   ;;  %v909_v38 = vpop.f32.mrf.mxu0 }
 0x294 PF: > { %s681_s11 = sand.u32 1, %s1255_s27   ;;  %p1644_p2 = scmp.ne.s32.totalorder %s1629_s14, 0 }
 0x295   : > { %p1645_p4 = scmp.ge.s32.totalorder %s1275_s10, 2  ;;  %s682_s13 = scalar_lea.sflag [#allocation4], %s681_s11 }
 0x297   : > { %p945_p6 = pnand %p1645_p4, %p1644_p2 }
 0x299   : > { %p946_p12 = pneg %p945_p6 }
 0x29b   : > { %1246 = dma.done.wait (%p946_p12), %s682_s13, 64  }
 0x29c   : > { %1248 = vsyncadd (%p946_p12), %s682_s13, 4294967232  ;;  %s1646_s22 = sadd.s32 4294967294, %s1275_s10  }
 0x29d   : > { %s690_s19 = sand.u32 1, %s1646_s22  }
 0x29e   : > { %s691_s18 = scalar_lea.sflag [#allocation12], %s690_s19 }
 0x29f   : > { %1250 = dma.done.wait (%p946_p12), %s691_s18, 128  }
 0x2a0   : > { %1252 = vsyncadd (%p946_p12), %s691_s18, 4294967168  ;;  %s30_s10 = sadd.s32 1, %s1275_s10   ;;  %s1647_s14 = sld [smem:[#allocation19_spill]] }
 0x2a1   : > { %p27_p5 = scmp.ge.s32.totalorder %s30_s10, 4   ;;  %s1648_s27 = smov %s1259_s28 }
 0x2a2   : > { %s1649_s28 = smov %s1263_s29  ;;  %s1650_s29 = smov %s1443_s25 }
 0x2a3   : > { %s1651_s30 = smov %s1271_s9  ;;  %29 = sbr.rel (!%p27_p5) target bundleno = 14 (0xe), region = 133 }
 0x2a6   : > { %s1652_s9 = smov %s1647_s14 }
 0x2a8   :  { %705 = vsyncpa [#allocation3], 1 }
 0x2a9   :  { %707 = vsyncpa [#allocation3 + $0x1], 1 }
 0x2aa   :  { %708 = vsyncpa [#allocation6], 1 }
 0x2ab   :  { %709 = vsyncpa [#allocation9], 1 }
 0x2ac   :  { %710 = vsyncpa [#allocation4], 1 }
 0x2ad   :  { %712 = vsyncpa [#allocation4 + $0x1], 1 }
 0x2ae   :  { %713 = vsyncpa [#allocation12], 1 }
 0x2af   :  { %715 = vsyncpa [#allocation12 + $0x1], 1 }

</bundles_post_ra>
